<compile_context>
chip_gen: v7x
topology: tpu7x:2x2x1
jax: 0.10.0
libtpu: 0.0.40
codegen_flags: <defaults>
</compile_context>

<pallas_src>
import functools

import jax
import jax.numpy as jnp
from jax.experimental import pallas as pl
from jax.experimental.pallas import tpu as pltpu


def _round_up(x, m):
    return (x + m - 1) // m * m


def _label_embed_kernel(num_classes, labels_ref, drop_ref, table_ref, out_ref):
    """One batch-tile of the LabelEmbedder forward.

    labels_ref : (TB, 1) int32  raw class labels for this tile
    drop_ref   : (TB, 1) int32  1 -> replace label with the CFG null class
    table_ref  : (V, H)         full embedding table, resident in VMEM
    out_ref    : (TB, H)        gathered embeddings
    """
    labels = labels_ref[...]                                   # (TB, 1)
    drop = drop_ref[...]                                       # (TB, 1)
    # Fused token_drop: substitute the null-class index where drop == 1.
    eff = jnp.where(drop != 0, jnp.int32(num_classes), labels)  # (TB, 1)

    tb = out_ref.shape[0]
    v = table_ref.shape[0]

    # One-hot MXU gather: onehot[b, c] = (c == eff[b]); out = onehot @ table.
    onehot = jax.lax.broadcasted_iota(jnp.int32, (tb, v), 1) == eff
    onehot = onehot.astype(table_ref.dtype)
    out_ref[...] = jnp.dot(
        onehot,
        table_ref[...],
        preferred_element_type=jnp.float32,
        precision=jax.lax.Precision.HIGHEST,   # exact row reproduction
    ).astype(out_ref.dtype)


def embedding_lookup_pallas(labels, drop_mask, table, num_classes, *, block_b=None):
    """out[b] = table[where(drop_mask[b], num_classes, labels[b])] via Pallas."""
    labels = labels.astype(jnp.int32)
    drop_mask = drop_mask.astype(jnp.int32)
    B = labels.shape[0]
    V, H = table.shape

    # Batch tile: multiple of 8 sublanes, capped at 128 rows per grid step.
    if block_b is None:
        block_b = min(128, _round_up(B, 8))
    B_pad = _round_up(B, block_b)

    # Pad batch to a whole number of tiles (padded rows use label 0, no drop;
    # their outputs are sliced off below).
    labels_p = jnp.zeros((B_pad, 1), jnp.int32).at[:B, 0].set(labels)
    drop_p = jnp.zeros((B_pad, 1), jnp.int32).at[:B, 0].set(drop_mask)

    kernel = functools.partial(_label_embed_kernel, num_classes)

    out = pl.pallas_call(
        kernel,
        out_shape=jax.ShapeDtypeStruct((B_pad, H), table.dtype),
        grid_spec=pltpu.PrefetchScalarGridSpec(
            num_scalar_prefetch=0,
            grid=(B_pad // block_b,),
            in_specs=[
                pl.BlockSpec((block_b, 1), lambda i: (i, 0)),   # labels tile
                pl.BlockSpec((block_b, 1), lambda i: (i, 0)),   # drop-mask tile
                pl.BlockSpec((V, H), lambda i: (0, 0)),         # table, VMEM-resident
            ],
            out_specs=pl.BlockSpec((block_b, H), lambda i: (i, 0)),
        ),
        compiler_params=pltpu.CompilerParams(
            dimension_semantics=("parallel",),   # independent batch tiles
        ),
    )(labels_p, drop_p, table)

    return out[:B]


def label_embedder_forward(labels, table, *, num_classes, dropout_prob,
                           train, dropout_key=None, force_drop_ids=None):
    """Mirrors LabelEmbedder.forward()."""
    B = labels.shape[0]
    use_dropout = dropout_prob > 0
    if (train and use_dropout) or (force_drop_ids is not None):
        # Same edge case as the PyTorch original: if force_drop_ids is used with
        # dropout_prob == 0 there is no null row; here the one-hot just yields a
        # zero row instead of reading out of range.
        if force_drop_ids is None:
            drop_mask = (
                jax.random.uniform(dropout_key, (B,)) < dropout_prob
            ).astype(jnp.int32)
        else:
            drop_mask = (force_drop_ids == 1).astype(jnp.int32)
    else:
        drop_mask = jnp.zeros((B,), jnp.int32)
    return embedding_lookup_pallas(labels, drop_mask, table, num_classes)


if __name__ == "__main__":
    num_classes = 10
    hidden_size = 128        # lane-aligned hidden
    dropout_prob = 0.1
    batch = 8

    key = jax.random.PRNGKey(0)
    k_table, k_labels, k_drop = jax.random.split(key, 3)

    # nn.Embedding default init: N(0, 1). One extra row for the CFG null class.
    use_cfg_embedding = int(dropout_prob > 0)
    table = jax.random.normal(
        k_table, (num_classes + use_cfg_embedding, hidden_size), dtype=jnp.float32
    )
    labels = jax.random.randint(k_labels, (batch,), 0, num_classes, dtype=jnp.int32)

    # --- eval path (no dropout) ---
    out_eval = label_embedder_forward(
        labels, table, num_classes=num_classes, dropout_prob=dropout_prob,
        train=False,
    )
    out_eval = jax.block_until_ready(out_eval)
    ref_eval = table[labels]
    assert out_eval.shape == (batch, hidden_size)
    assert jnp.allclose(out_eval, ref_eval, rtol=1e-5, atol=1e-5), \
        "eval-path mismatch vs reference gather"

    # --- train path with forced drops (deterministic CFG dropout check) ---
    force_drop_ids = jnp.array([1, 0, 1, 0, 0, 0, 0, 1], dtype=jnp.int32)
    out_forced = label_embedder_forward(
        labels, table, num_classes=num_classes, dropout_prob=dropout_prob,
        train=True, dropout_key=k_drop, force_drop_ids=force_drop_ids,
    )
    out_forced = jax.block_until_ready(out_forced)
    dropped_labels = jnp.where(force_drop_ids == 1, num_classes, labels)
    ref_forced = table[dropped_labels]
    assert jnp.allclose(out_forced, ref_forced, rtol=1e-5, atol=1e-5), \
        "forced-drop path mismatch"

    # --- train path with random dropout (stochastic; just run it) ---
    out_train = label_embedder_forward(
        labels, table, num_classes=num_classes, dropout_prob=dropout_prob,
        train=True, dropout_key=k_drop,
    )
    out_train = jax.block_until_ready(out_train)
    # Every output row must equal SOME table row (either the label's or null's).
    match_label = jnp.all(jnp.isclose(out_train, table[labels], rtol=1e-5, atol=1e-5), axis=-1)
    match_null = jnp.all(
        jnp.isclose(out_train, table[jnp.full((batch,), num_classes)], rtol=1e-5, atol=1e-5),
        axis=-1,
    )
    assert bool(jnp.all(match_label | match_null)), "random-drop rows are not table rows"

    print("KERNEL_OK")
</pallas_src>

<mosaic_0001>
module attributes {stable_mosaic.version = 11 : i64} {
  func.func @_label_embed_kernel(%arg0: i32, %arg1: memref<8x1xi32, #tpu.memory_space<vmem>>, %arg2: memref<8x1xi32, #tpu.memory_space<vmem>>, %arg3: memref<11x128xf32, #tpu.memory_space<vmem>>, %arg4: memref<8x128xf32, #tpu.memory_space<vmem>>) attributes {dimension_semantics = [#tpu.dimension_semantics<parallel>], iteration_bounds = array<i64: 1>, scalar_prefetch = 0 : i64, scratch_operands = 0 : i64, tpu.core_type = #tpu.core_type<tc>, window_params = [{transform_indices = @transform_0, window_bounds = array<i64: 8, 1>}, {transform_indices = @transform_1, window_bounds = array<i64: 8, 1>}, {pipeline_mode = #tpu.pipeline_mode<synchronous>, transform_indices = @transform_2, window_bounds = array<i64: 11, 128>}, {transform_indices = @transform_3, window_bounds = array<i64: 8, 128>}]} {
    %c0 = arith.constant 0 : index
    %c0_0 = arith.constant 0 : index
    %0 = vector.load %arg1[%c0, %c0_0] : memref<8x1xi32, #tpu.memory_space<vmem>>, vector<8x1xi32>
    %c0_1 = arith.constant 0 : index
    %c0_2 = arith.constant 0 : index
    %1 = vector.load %arg2[%c0_1, %c0_2] : memref<8x1xi32, #tpu.memory_space<vmem>>, vector<8x1xi32>
    %c0_i32 = arith.constant 0 : i32
    %2 = vector.broadcast %c0_i32 : i32 to vector<8x1xi32>
    %3 = arith.cmpi ne, %1, %2 : vector<8x1xi32>
    %c10_i32 = arith.constant 10 : i32
    %4 = vector.broadcast %c10_i32 : i32 to vector<8x1xi32>
    %5 = arith.select %3, %4, %0 : vector<8x1xi1>, vector<8x1xi32>
    %6 = tpu.iota {dimensions = array<i32: 1>} : vector<8x11xi32>
    %7 = vector.broadcast %5 : vector<8x1xi32> to vector<8x11xi32>
    %8 = arith.cmpi eq, %6, %7 : vector<8x11xi32>
    %9 = arith.extui %8 : vector<8x11xi1> to vector<8x11xi32>
    %10 = arith.sitofp %9 : vector<8x11xi32> to vector<8x11xf32>
    %c0_3 = arith.constant 0 : index
    %c0_4 = arith.constant 0 : index
    %11 = vector.load %arg3[%c0_3, %c0_4] : memref<11x128xf32, #tpu.memory_space<vmem>>, vector<11x128xf32>
    %cst = arith.constant dense<0.000000e+00> : vector<8x128xf32>
    %12 = tpu.matmul %10, %11, %cst {dimension_numbers = #tpu.dot_dimension_numbers<[1], [0], [0], [1], [0, 0, 1, 1], [], []>, precision = #tpu.contract_precision<fp32>} : vector<8x11xf32>, vector<11x128xf32>, vector<8x128xf32> -> vector<8x128xf32>
    %c0_5 = arith.constant 0 : index
    %c0_6 = arith.constant 0 : index
    %13 = vector.load %arg4[%c0_5, %c0_6] : memref<8x128xf32, #tpu.memory_space<vmem>>, vector<8x128xf32>
    tpu.vector_store %arg4[%c0_5, %c0_6], %12 {strides = array<i32>} : memref<8x128xf32, #tpu.memory_space<vmem>>, vector<8x128xf32>,
    return
  }
  func.func @transform_0(%arg0: i32) -> (i32, i32) {
    %c0_i32 = arith.constant 0 : i32
    %c0_i32_0 = arith.constant 0 : i32
    return %arg0, %c0_i32 : i32, i32
  }
  func.func @transform_1(%arg0: i32) -> (i32, i32) {
    %c0_i32 = arith.constant 0 : i32
    %c0_i32_0 = arith.constant 0 : i32
    return %arg0, %c0_i32 : i32, i32
  }
  func.func @transform_2(%arg0: i32) -> (i32, i32) {
    %c0_i32 = arith.constant 0 : i32
    %c0_i32_0 = arith.constant 0 : i32
    %c0_i32_1 = arith.constant 0 : i32
    return %c0_i32, %c0_i32_0 : i32, i32
  }
  func.func @transform_3(%arg0: i32) -> (i32, i32) {
    %c0_i32 = arith.constant 0 : i32
    %c0_i32_0 = arith.constant 0 : i32
    return %arg0, %c0_i32 : i32, i32
  }
}

</mosaic_0001>

<bundles_post_ra>
// kernel: tpu_custom_call.1
= control target key start
LH: loop header
LB: loop body
LE: loop exit
PB: predicated region body
PF: predicated region fallthrough
CT: control target
= control target key end

     0   :  { %v632_v2 = vmov 0   ;;  %vm33_vm1 = vcmask 1042432   ;;  %s691_s0 = inlined_call_operand.vmem [shape: s32[8,1], index: 0, kind: input, shape index: {}]   ;;  %s692_s1 = inlined_call_operand.vmem [shape: s32[8,1], index: 1, kind: input, shape index: {}]   ;;  %s693_s2 = inlined_call_operand.vmem [shape: f32[11,128], index: 2, kind: input, shape index: {}]   ;;  %s694_s3 = inlined_call_operand.hbm [shape: f32[8,128], index: 3, kind: output, shape index: {}]  }
   0x1   :  { %v15_v0 = vld [vmem:[%s691_s0] sm:$0xff]  ;;  %607 = vset.pattern.permute.xlu0 %v632_v2  ;;  %v28_v3 = vld [vmem:[%s693_s2 + $0x8] sm:$0x7] }
   0x2   :  { %v16_v1 = vld [vmem:[%s692_s1] sm:$0xff] }
   0x3   :  { %vm17_vm0 = vcmp.ne.s32.totalorder %v16_v1, 0 }
   0x4   :  { %8 = vsyncpa [#allocation3], 0  ;;  %v18_v4 = vsel %vm17_vm0, 10, %v15_v0  ;;  %v27_v5 = vld [vmem:[%s693_s2] sm:$0xff]  ;;  %v35_v6 = vsel %vm33_vm1, %v28_v3, 0  ;;  %v633_v10 = vmov 0.0|0.0   ;;  %v19_v23 = vlaneseq }
   0x5   :  { %22 = vperm.xlu0 %607, %v18_v4   ;;  %v38_v7 = vand.u32 4294901760, %v27_v5  ;;  %v41_v8 = vand.u32 4294901760, %v35_v6  ;;  %584 = vmatprep.subr.bf16.mxu0 %v633_v10  ;;  %vm634_vm2 = vmmov 0   ;;  %v635_v13 = vmov 0.0   ;;  %s636_s0 = smov [#allocation2]  }
   0x6   :  { %575 = vmatprep.subr.bf16.mxu1 %v633_v10  ;;  %558 = vmatprep.mubr.msk.f32.mxu0 %vm634_vm2, %v635_v13  ;;  %v20_v24 = vand.u32 127, %v19_v23  ;;  %vm29_vm3 = vcmask 89088   ;;  %s503_s1 = sshll.u32 %s636_s0, 4  ;;  %s504_s1 = int_to_ptr.vmem [resolvable:$true] %s503_s1 }
   0x7   :  { %v576_v9 = vpack.c.bf16 %v41_v8, %v38_v7  ;;  %v116_v11 = vsub.f32 %v27_v5, %v38_v7  ;;  %v123_v12 = vsub.f32 %v35_v6, %v41_v8  ;;  %537 = vmatprep.mubr.msk.f32.mxu1 %vm634_vm2, %v635_v13  ;;  %s608_s2 = scalar_lea.vmem %s504_s1, 128  ;;  %p613_p1 = scmp.lt.s32.totalorder %s504_s1, %s504_s1 }
   0x8   :  { %p609_p0 = scmp.ne.s32.totalorder %s504_s1, %s608_s2  ;;  %p614_p2 = scmp.lt.s32.totalorder %s608_s2, %s608_s2 }
   0x9   :  { %586 = vmatpush3.bf16.msra.mxu0 %v576_v9  ;;  %577 = vmatpush3.bf16.msra.mxu1 %v576_v9  ;;  %v117_v14 = vand.u32 4294901760, %v116_v11  ;;  %v124_v15 = vand.u32 4294901760, %v123_v12  ;;  %v582_v22 = vpack.c.bf16 %v123_v12, %v116_v11 }
   0xa   :  { %578 = vmatprep.subr.bf16.mxu1 %v633_v10  ;;  %587 = vmatprep.subr.bf16.mxu0 %v633_v10  ;;  %p615_p3 = por %p614_p2, %p613_p1 }
   0xb   :  { %v118_v16 = vsub.f32 %v116_v11, %v117_v14  ;;  %v125_v17 = vsub.f32 %v123_v12, %v124_v15  ;;  %v588_v18 = vpack.c.bf16 %v124_v15, %v117_v14 }
   0xc   :  { %p616_p4 = pnand %p615_p3, %p609_p0 }
   0xd   :  { %v119_v19 = vand.u32 4294901760, %v118_v16  ;;  %v126_v20 = vand.u32 4294901760, %v125_v17 }
   0xf   :  { %v579_v21 = vpack.c.bf16 %v126_v20, %v119_v19 }
  0x84   :  { %v23_v25 = vpop.permute.xlu0 %22 }
  0x85   :  { %vm24_vm4 = vcmp.eq.s32.totalorder %v20_v24, %v23_v25 }
  0x86   :  { %v511_v26 = vsel %vm24_vm4, 1.0, %v635_v13 }
  0x87   :  { %v31_v27 = vsel %vm29_vm3, %v511_v26, 0 }
  0x88   :  { %v105_v28 = vsub.f32 %v31_v27, %v31_v27 }
  0x8a   :  { %v106_v29 = vand.u32 4294901760, %v105_v28 }
  0x8c   :  { %559 = vmatmul.mubr.f32.vlgmr.msra.gmra.mrb[0].mxu0 %v106_v29  ;;  %v107_v30 = vsub.f32 %v105_v28, %v106_v29 }
  0x8d   :  { %589 = vmatpush3.bf16.msra.mxu0 %v588_v18  ;;  %565 = vmatprep.mubr.msk.f32.mxu0 %vm634_vm2, %v635_v13 }
  0x8e   :  { %v108_v31 = vand.u32 4294901760, %v107_v30  ;;  %590 = vmatprep.subr.bf16.mxu0 %v633_v10 }
  0x90   :  { %538 = vmatmul.mubr.f32.vlgmr.msra.gmra.mrb[0].mxu1 %v108_v31 }
  0x91   :  { %580 = vmatpush3.bf16.msra.mxu1 %v579_v21  ;;  %544 = vmatprep.mubr.msk.f32.mxu1 %vm634_vm2, %v635_v13 }
  0x92   :  { %581 = vmatprep.subr.bf16.mxu1 %v633_v10 }
  0x94   :  { %566 = vmatmul.mubr.msk.f32.vlgmr.msra.gmra.mrb[0].mxu0 %vm29_vm3, %v511_v26 }
  0x95   :  { %592 = vmatpush3.bf16.msra.mxu0 %v576_v9  ;;  %572 = vmatprep.mubr.msk.f32.mxu0 %vm634_vm2, %v635_v13 }
  0x98   :  { %545 = vmatmul.mubr.msk.f32.vlgmr.msra.gmra.mrb[0].mxu1 %vm29_vm3, %v511_v26 }
  0x99   :  { %583 = vmatpush3.bf16.msra.mxu1 %v582_v22  ;;  %551 = vmatprep.mubr.msk.f32.mxu1 %vm634_vm2, %v635_v13 }
  0x9c   :  { %573 = vmatmul.mubr.msk.f32.vlgmr.msra.gmra.mrb[0].mxu0 %vm29_vm3, %v511_v26 }
  0xa0   :  { %552 = vmatmul.mubr.f32.vlgmr.msra.gmra.mrb[0].mxu1 %v105_v28 }
 0x16f   :  { %v492_v32 = vpop.f32.mrb[0].mxu0 }
 0x170   :  { %v574_v33 = vpop.f32.mrb[1].mxu0 }
 0x173   :  { %v267_v34 = vpop.f32.mrb[0].mxu1 }
 0x174   :  { %v593_v35 = vadd.f32 %v492_v32, %v267_v34  ;;  %v553_v36 = vpop.f32.mrb[1].mxu1 }
 0x176   :  { %496 = vst [vmem:[#allocation2] sm:$0xff] %v593_v35 }
 0x177   :  { %619 = shalt.err (!%p616_p4)
}
 0x178   :  { %s620_s22 = scalar_lea.hbm %s694_s3, 128 }
 0x179   :  { %p621_p5 = scmp.ne.s32.totalorder %s694_s3, %s620_s22  ;;  %p624_p6 = scmp.lt.u32.totalorder %s620_s22, %s694_s3 }
 0x17b   :  { %p626_p7 = pnand %p624_p6, %p621_p5 }
 0x17d   :  { %629 = shalt.err (!%p626_p7)
}
 0x17e   :  { %506 = dma.vmem_to_hbm [thread:$0]  %s504_s1, 128, %s694_s3, [#allocation3]  }
 0x17f   :  { %630 = dma.done.wait [#allocation3], 128  }
 0x180   :  { %631 = vsyncadd [#allocation3], 4294967168 }
 0x181   :  { %510 = vsyncpa [#allocation3], 1 }

</bundles_post_ra>
